<compile_context>
chip_gen: v7x
topology: tpu7x:2x2x1
jax: 0.10.0
libtpu: 0.0.40
codegen_flags: <defaults>
</compile_context>

<pallas_src>
import jax
import jax.numpy as jnp
from jax.experimental import pallas as pl
from jax.experimental.pallas import tpu as pltpu


def _round_up(x, m):
    return ((x + m - 1) // m) * m


def _cdiv(a, b):
    return -(-a // b)


def masked_nll_loss(pred, target, mask, weight=None, *, block_n=4096, num_shards=2):
    """pred: (N, C) log-probs (f32 or bf16); target: (N,) int; mask: (batch, seq_len)."""
    N, C = pred.shape
    lane = 128

    # ---- pick the row-block size under a conservative VMEM budget ----------
    pred_row_bytes = _round_up(C, lane) * pred.dtype.itemsize       # lane-padded VMEM row
    aux_row_bytes = 2 * lane * 4                                    # (tn,1) target + mask rows
    per_row = 2 * (pred_row_bytes + aux_row_bytes) + 2 * lane * 4   # dbl-buffered inputs + f32 accs
    vmem_budget = 24 * 1024 * 1024                                  # fits v7x's 64 MiB/TC with headroom
    max_tn = max(8, ((vmem_budget // per_row) // 8) * 8)
    tn = min(block_n, _round_up(N, 8), max_tn)
    tn = _round_up(tn, 8)

    nb_total = _cdiv(N, tn)
    P = max(1, min(num_shards, nb_total))        # leading "parallel" axis (v7x megacore)
    nb_per_shard = _cdiv(nb_total, P)
    clamp = nb_total - 1

    # weight=None is equivalent to unit class weights: numerator is identical
    # and sum(1[target]*mask) == sum(mask), so one kernel covers both paths.
    if weight is None:
        w = jnp.ones((1, C), jnp.float32)
    else:
        w = weight.astype(jnp.float32).reshape(1, C)

    # Cheap reshapes only (tiny arrays); pred itself is passed through untouched.
    tgt2 = target.reshape(N, 1).astype(jnp.int32)
    msk2 = mask.reshape(N, 1).astype(jnp.float32)

    def kernel(pred_ref, tgt_ref, mask_ref, w_ref, num_out_ref, den_out_ref,
               num_acc, den_acc):
        p = pl.program_id(0)
        i = pl.program_id(1)

        @pl.when(i == 0)
        def _():
            num_acc[...] = jnp.zeros_like(num_acc)
            den_acc[...] = jnp.zeros_like(den_acc)

        # Row-validity predicate for the (possibly clamped / partial) block.
        blk = p * nb_per_shard + i                                   # unclamped block id
        rows = blk * tn + jax.lax.broadcasted_iota(jnp.int32, (tn, 1), 0)
        valid = rows < N

        pred_f = pred_ref[...].astype(jnp.float32)                   # (tn, C)
        tgt = tgt_ref[...]                                           # (tn, 1) int32
        msk = mask_ref[...]                                          # (tn, 1) f32
        w_row = w_ref[...]                                           # (1,  C) f32

        # Fused one-hot gather: weight[target] and weight[target]*pred[i,target].
        cls = jax.lax.broadcasted_iota(jnp.int32, (tn, C), 1)
        onehot = cls == tgt
        wsel = jnp.where(onehot, w_row, 0.0)                         # (tn, C)
        w_t = jnp.sum(wsel, axis=-1, keepdims=True)                  # (tn, 1)
        wp_t = jnp.sum(wsel * pred_f, axis=-1, keepdims=True)        # (tn, 1)

        # Select (not multiply) with `valid` so garbage tail rows cannot leak NaNs.
        num_acc[...] += jnp.where(valid, -msk * wp_t, 0.0)
        den_acc[...] += jnp.where(valid, msk * w_t, 0.0)

        @pl.when(i == nb_per_shard - 1)
        def _():
            num_out_ref[...] = jnp.sum(num_acc[...], axis=0, keepdims=True)[None]
            den_out_ref[...] = jnp.sum(den_acc[...], axis=0, keepdims=True)[None]

    def blk_map(p, i):
        return (jnp.minimum(p * nb_per_shard + i, clamp), 0)

    cost = pl.CostEstimate(
        flops=int(8 * P * nb_per_shard * tn * C),
        transcendentals=0,
        bytes_accessed=int(pred.size * pred.dtype.itemsize
                           + (tgt2.size + msk2.size + w.size + 2 * P) * 4),
    )

    num_out, den_out = pl.pallas_call(
        kernel,
        out_shape=(jax.ShapeDtypeStruct((P, 1, 1), jnp.float32),
                   jax.ShapeDtypeStruct((P, 1, 1), jnp.float32)),
        grid_spec=pltpu.PrefetchScalarGridSpec(
            num_scalar_prefetch=0,
            grid=(P, nb_per_shard),
            in_specs=[
                pl.BlockSpec((tn, C), blk_map),             # pred rows (original dtype)
                pl.BlockSpec((tn, 1), blk_map),             # target rows
                pl.BlockSpec((tn, 1), blk_map),             # mask rows
                pl.BlockSpec((1, C), lambda p, i: (0, 0)),  # class weights
            ],
            out_specs=(pl.BlockSpec((1, 1, 1), lambda p, i: (p, 0, 0)),
                       pl.BlockSpec((1, 1, 1), lambda p, i: (p, 0, 0))),
            scratch_shapes=[pltpu.VMEM((tn, 1), jnp.float32),   # per-row numerator acc
                            pltpu.VMEM((tn, 1), jnp.float32)],  # per-row denominator acc
        ),
        compiler_params=pltpu.CompilerParams(
            dimension_semantics=("parallel", "arbitrary"),
            vmem_limit_bytes=32 * 1024 * 1024,
        ),
        cost_estimate=cost,
    )(pred, tgt2, msk2, w)

    # Combine per-shard partial sums; divide once, after both reductions.
    return jnp.sum(num_out) / jnp.sum(den_out)


if __name__ == "__main__":
    def reference(pred, target, mask, weight):
        mask_flat = mask.reshape(-1).astype(jnp.float32)
        p_t = jnp.take_along_axis(pred.astype(jnp.float32),
                                  target[:, None], axis=1)[:, 0]
        if weight is None:
            return jnp.sum(-p_t * mask_flat) / jnp.sum(mask_flat)
        w_t = weight[target]
        return jnp.sum(-w_t * p_t * mask_flat) / jnp.sum(w_t * mask_flat)

    # ---- case 1: batch=2, seq_len=8, n_classes=7 (single block) -------------
    batch, seq_len, n_classes = 2, 8, 7
    N = batch * seq_len
    k1, k2, k3, k4 = jax.random.split(jax.random.PRNGKey(0), 4)
    logits = jax.random.normal(k1, (N, n_classes), jnp.float32)
    pred = jax.nn.log_softmax(logits, axis=-1)            # NLLLoss expects log-probs
    target = jax.random.randint(k2, (N,), 0, n_classes, jnp.int32)
    mask = (jax.random.uniform(k3, (batch, seq_len)) > 0.3).astype(jnp.float32)
    weight = jax.random.uniform(k4, (n_classes,), jnp.float32) + 0.5

    loss = masked_nll_loss(pred, target, mask, None)
    jax.block_until_ready(loss)
    ref = reference(pred, target, mask, None)
    assert loss.shape == ()
    assert jnp.allclose(loss, ref, atol=1e-5, rtol=1e-5), (loss, ref)

    loss_w = masked_nll_loss(pred, target, mask, weight)
    jax.block_until_ready(loss_w)
    ref_w = reference(pred, target, mask, weight)
    assert jnp.allclose(loss_w, ref_w, atol=1e-5, rtol=1e-5), (loss_w, ref_w)

    # ---- case 2: multi-block grid + partial tail + bf16 pred + 2 shards -----
    batch2, seq_len2, n_classes2 = 3, 50, 7
    N2 = batch2 * seq_len2
    k5, k6, k7, k8 = jax.random.split(jax.random.PRNGKey(1), 4)
    logits2 = jax.random.normal(k5, (N2, n_classes2), jnp.float32)
    pred2 = jax.nn.log_softmax(logits2, axis=-1).astype(jnp.bfloat16)
    target2 = jax.random.randint(k6, (N2,), 0, n_classes2, jnp.int32)
    mask2 = (jax.random.uniform(k7, (batch2, seq_len2)) > 0.4).astype(jnp.float32)
    weight2 = jax.random.uniform(k8, (n_classes2,), jnp.float32) + 0.5

    loss2 = masked_nll_loss(pred2, target2, mask2, weight2, block_n=64)
    jax.block_until_ready(loss2)
    ref2 = reference(pred2, target2, mask2, weight2)
    assert jnp.allclose(loss2, ref2, atol=1e-4, rtol=1e-4), (loss2, ref2)

    loss2u = masked_nll_loss(pred2, target2, mask2, None, block_n=64)
    jax.block_until_ready(loss2u)
    ref2u = reference(pred2, target2, mask2, None)
    assert jnp.allclose(loss2u, ref2u, atol=1e-4, rtol=1e-4), (loss2u, ref2u)

    print("KERNEL_OK")
</pallas_src>

<mosaic_0001>
module attributes {stable_mosaic.version = 11 : i64} {
  func.func @kernel(%arg0: i32, %arg1: i32, %arg2: memref<16x7xf32, #tpu.memory_space<vmem>>, %arg3: memref<16x1xi32, #tpu.memory_space<vmem>>, %arg4: memref<16x1xf32, #tpu.memory_space<vmem>>, %arg5: memref<1x7xf32, #tpu.memory_space<vmem>>, %arg6: memref<1x1x1xf32, #tpu.memory_space<vmem>>, %arg7: memref<1x1x1xf32, #tpu.memory_space<vmem>>, %arg8: memref<16x1xf32, #tpu.memory_space<vmem>>, %arg9: memref<16x1xf32, #tpu.memory_space<vmem>>) attributes {dimension_semantics = [#tpu.dimension_semantics<parallel>, #tpu.dimension_semantics<arbitrary>], iteration_bounds = array<i64: 1, 1>, scalar_prefetch = 0 : i64, scratch_operands = 2 : i64, tpu.core_type = #tpu.core_type<tc>, window_params = [{transform_indices = @transform_0, window_bounds = array<i64: 16, 7>}, {transform_indices = @transform_1, window_bounds = array<i64: 16, 1>}, {transform_indices = @transform_2, window_bounds = array<i64: 16, 1>}, {pipeline_mode = #tpu.pipeline_mode<synchronous>, transform_indices = @transform_3, window_bounds = array<i64: 1, 7>}, {transform_indices = @transform_4, window_bounds = array<i64: 1, 1, 1>}, {transform_indices = @transform_5, window_bounds = array<i64: 1, 1, 1>}]} {
    %c0_i32 = arith.constant 0 : i32
    %0 = arith.cmpi eq, %arg1, %c0_i32 : i32
    %1 = arith.extui %0 : i1 to i32
    %c0_i32_0 = arith.constant 0 : i32
    %2 = arith.cmpi ne, %1, %c0_i32_0 : i32
    scf.if %2 {
      %cst_24 = arith.constant 0.000000e+00 : f32
      %44 = vector.broadcast %cst_24 : f32 to vector<16x1xf32>
      %c0_25 = arith.constant 0 : index
      %c0_26 = arith.constant 0 : index
      %45 = vector.load %arg8[%c0_25, %c0_26] : memref<16x1xf32, #tpu.memory_space<vmem>>, vector<16x1xf32>
      tpu.vector_store %arg8[%c0_25, %c0_26], %44 {strides = array<i32>} : memref<16x1xf32, #tpu.memory_space<vmem>>, vector<16x1xf32>,
      %cst_27 = arith.constant 0.000000e+00 : f32
      %46 = vector.broadcast %cst_27 : f32 to vector<16x1xf32>
      %c0_28 = arith.constant 0 : index
      %c0_29 = arith.constant 0 : index
      %47 = vector.load %arg9[%c0_28, %c0_29] : memref<16x1xf32, #tpu.memory_space<vmem>>, vector<16x1xf32>
      tpu.vector_store %arg9[%c0_28, %c0_29], %46 {strides = array<i32>} : memref<16x1xf32, #tpu.memory_space<vmem>>, vector<16x1xf32>,
    } else {
    }
    %c1_i32 = arith.constant 1 : i32
    %3 = arith.muli %arg0, %c1_i32 : i32
    %4 = arith.addi %3, %arg1 : i32
    %c16_i32 = arith.constant 16 : i32
    %5 = arith.muli %4, %c16_i32 : i32
    %6 = tpu.iota {dimensions = array<i32: 0>} : vector<16x1xi32>
    %7 = vector.broadcast %5 : i32 to vector<16x1xi32>
    %8 = arith.addi %7, %6 : vector<16x1xi32>
    %c16_i32_1 = arith.constant 16 : i32
    %9 = vector.broadcast %c16_i32_1 : i32 to vector<16x1xi32>
    %10 = arith.cmpi slt, %8, %9 : vector<16x1xi32>
    %c0 = arith.constant 0 : index
    %c0_2 = arith.constant 0 : index
    %11 = vector.load %arg2[%c0, %c0_2] : memref<16x7xf32, #tpu.memory_space<vmem>>, vector<16x7xf32>
    %c0_3 = arith.constant 0 : index
    %c0_4 = arith.constant 0 : index
    %12 = vector.load %arg3[%c0_3, %c0_4] : memref<16x1xi32, #tpu.memory_space<vmem>>, vector<16x1xi32>
    %c0_5 = arith.constant 0 : index
    %c0_6 = arith.constant 0 : index
    %13 = vector.load %arg4[%c0_5, %c0_6] : memref<16x1xf32, #tpu.memory_space<vmem>>, vector<16x1xf32>
    %c0_7 = arith.constant 0 : index
    %c0_8 = arith.constant 0 : index
    %14 = vector.load %arg5[%c0_7, %c0_8] : memref<1x7xf32, #tpu.memory_space<vmem>>, vector<1x7xf32>
    %15 = tpu.iota {dimensions = array<i32: 1>} : vector<16x7xi32>
    %16 = vector.broadcast %12 : vector<16x1xi32> to vector<16x7xi32>
    %17 = arith.cmpi eq, %15, %16 : vector<16x7xi32>
    %cst = arith.constant 0.000000e+00 : f32
    %18 = vector.shape_cast %14 : vector<1x7xf32> to vector<1x7xf32>
    %19 = vector.broadcast %18 : vector<1x7xf32> to vector<16x7xf32>
    %20 = vector.broadcast %cst : f32 to vector<16x7xf32>
    %21 = arith.select %17, %19, %20 : vector<16x7xi1>, vector<16x7xf32>
    %cst_9 = arith.constant dense<0.000000e+00> : vector<16xf32>
    %22 = vector.multi_reduction <add>, %21, %cst_9 [1] : vector<16x7xf32> to vector<16xf32>
    %23 = vector.shape_cast %22 : vector<16xf32> to vector<16x1xf32>
    %24 = arith.mulf %21, %11 : vector<16x7xf32>
    %cst_10 = arith.constant dense<0.000000e+00> : vector<16xf32>
    %25 = vector.multi_reduction <add>, %24, %cst_10 [1] : vector<16x7xf32> to vector<16xf32>
    %26 = vector.shape_cast %25 : vector<16xf32> to vector<16x1xf32>
    %c0_11 = arith.constant 0 : index
    %c0_12 = arith.constant 0 : index
    %27 = vector.load %arg8[%c0_11, %c0_12] : memref<16x1xf32, #tpu.memory_space<vmem>>, vector<16x1xf32>
    %cst_13 = arith.constant 0.000000e+00 : f32
    %28 = vector.broadcast %cst_13 : f32 to vector<16x1xf32>
    %29 = arith.subf %28, %13 : vector<16x1xf32>
    %30 = arith.mulf %29, %26 : vector<16x1xf32>
    %cst_14 = arith.constant 0.000000e+00 : f32
    %31 = vector.broadcast %cst_14 : f32 to vector<16x1xf32>
    %32 = arith.select %10, %30, %31 : vector<16x1xi1>, vector<16x1xf32>
    %33 = arith.addf %27, %32 : vector<16x1xf32>
    %c0_15 = arith.constant 0 : index
    %c0_16 = arith.constant 0 : index
    %34 = vector.load %arg8[%c0_15, %c0_16] : memref<16x1xf32, #tpu.memory_space<vmem>>, vector<16x1xf32>
    tpu.vector_store %arg8[%c0_15, %c0_16], %33 {strides = array<i32>} : memref<16x1xf32, #tpu.memory_space<vmem>>, vector<16x1xf32>,
    %c0_17 = arith.constant 0 : index
    %c0_18 = arith.constant 0 : index
    %35 = vector.load %arg9[%c0_17, %c0_18] : memref<16x1xf32, #tpu.memory_space<vmem>>, vector<16x1xf32>
    %36 = arith.mulf %13, %23 : vector<16x1xf32>
    %cst_19 = arith.constant 0.000000e+00 : f32
    %37 = vector.broadcast %cst_19 : f32 to vector<16x1xf32>
    %38 = arith.select %10, %36, %37 : vector<16x1xi1>, vector<16x1xf32>
    %39 = arith.addf %35, %38 : vector<16x1xf32>
    %c0_20 = arith.constant 0 : index
    %c0_21 = arith.constant 0 : index
    %40 = vector.load %arg9[%c0_20, %c0_21] : memref<16x1xf32, #tpu.memory_space<vmem>>, vector<16x1xf32>
    tpu.vector_store %arg9[%c0_20, %c0_21], %39 {strides = array<i32>} : memref<16x1xf32, #tpu.memory_space<vmem>>, vector<16x1xf32>,
    %c0_i32_22 = arith.constant 0 : i32
    %41 = arith.cmpi eq, %arg1, %c0_i32_22 : i32
    %42 = arith.extui %41 : i1 to i32
    %c0_i32_23 = arith.constant 0 : i32
    %43 = arith.cmpi ne, %42, %c0_i32_23 : i32
    scf.if %43 {
      %c0_24 = arith.constant 0 : index
      %c0_25 = arith.constant 0 : index
      %44 = vector.load %arg8[%c0_24, %c0_25] : memref<16x1xf32, #tpu.memory_space<vmem>>, vector<16x1xf32>
      %cst_26 = arith.constant dense<0.000000e+00> : vector<1xf32>
      %45 = vector.multi_reduction <add>, %44, %cst_26 [0] : vector<16x1xf32> to vector<1xf32>
      %46 = vector.shape_cast %45 : vector<1xf32> to vector<1x1xf32>
      %47 = vector.shape_cast %46 : vector<1x1xf32> to vector<1x1x1xf32>
      %c0_27 = arith.constant 0 : index
      %c0_28 = arith.constant 0 : index
      %c0_29 = arith.constant 0 : index
      %48 = vector.load %arg6[%c0_27, %c0_28, %c0_29] : memref<1x1x1xf32, #tpu.memory_space<vmem>>, vector<1x1x1xf32>
      tpu.vector_store %arg6[%c0_27, %c0_28, %c0_29], %47 {strides = array<i32>} : memref<1x1x1xf32, #tpu.memory_space<vmem>>, vector<1x1x1xf32>,
      %c0_30 = arith.constant 0 : index
      %c0_31 = arith.constant 0 : index
      %49 = vector.load %arg9[%c0_30, %c0_31] : memref<16x1xf32, #tpu.memory_space<vmem>>, vector<16x1xf32>
      %cst_32 = arith.constant dense<0.000000e+00> : vector<1xf32>
      %50 = vector.multi_reduction <add>, %49, %cst_32 [0] : vector<16x1xf32> to vector<1xf32>
      %51 = vector.shape_cast %50 : vector<1xf32> to vector<1x1xf32>
      %52 = vector.shape_cast %51 : vector<1x1xf32> to vector<1x1x1xf32>
      %c0_33 = arith.constant 0 : index
      %c0_34 = arith.constant 0 : index
      %c0_35 = arith.constant 0 : index
      %53 = vector.load %arg7[%c0_33, %c0_34, %c0_35] : memref<1x1x1xf32, #tpu.memory_space<vmem>>, vector<1x1x1xf32>
      tpu.vector_store %arg7[%c0_33, %c0_34, %c0_35], %52 {strides = array<i32>} : memref<1x1x1xf32, #tpu.memory_space<vmem>>, vector<1x1x1xf32>,
    } else {
    }
    return
  }
  func.func @transform_0(%arg0: i32, %arg1: i32) -> (i32, i32) {
    %c1_i32 = arith.constant 1 : i32
    %0 = arith.muli %arg0, %c1_i32 : i32
    %1 = arith.addi %0, %arg1 : i32
    %c0_i32 = arith.constant 0 : i32
    %2 = arith.minsi %1, %c0_i32 : i32
    %c0_i32_0 = arith.constant 0 : i32
    %c0_i32_1 = arith.constant 0 : i32
    return %2, %c0_i32_0 : i32, i32
  }
  func.func @transform_1(%arg0: i32, %arg1: i32) -> (i32, i32) {
    %c1_i32 = arith.constant 1 : i32
    %0 = arith.muli %arg0, %c1_i32 : i32
    %1 = arith.addi %0, %arg1 : i32
    %c0_i32 = arith.constant 0 : i32
    %2 = arith.minsi %1, %c0_i32 : i32
    %c0_i32_0 = arith.constant 0 : i32
    %c0_i32_1 = arith.constant 0 : i32
    return %2, %c0_i32_0 : i32, i32
  }
  func.func @transform_2(%arg0: i32, %arg1: i32) -> (i32, i32) {
    %c1_i32 = arith.constant 1 : i32
    %0 = arith.muli %arg0, %c1_i32 : i32
    %1 = arith.addi %0, %arg1 : i32
    %c0_i32 = arith.constant 0 : i32
    %2 = arith.minsi %1, %c0_i32 : i32
    %c0_i32_0 = arith.constant 0 : i32
    %c0_i32_1 = arith.constant 0 : i32
    return %2, %c0_i32_0 : i32, i32
  }
  func.func @transform_3(%arg0: i32, %arg1: i32) -> (i32, i32) {
    %c0_i32 = arith.constant 0 : i32
    %c0_i32_0 = arith.constant 0 : i32
    %c0_i32_1 = arith.constant 0 : i32
    return %c0_i32, %c0_i32_0 : i32, i32
  }
  func.func @transform_4(%arg0: i32, %arg1: i32) -> (i32, i32, i32) {
    %c0_i32 = arith.constant 0 : i32
    %c0_i32_0 = arith.constant 0 : i32
    %c0_i32_1 = arith.constant 0 : i32
    return %arg0, %c0_i32, %c0_i32_0 : i32, i32, i32
  }
  func.func @transform_5(%arg0: i32, %arg1: i32) -> (i32, i32, i32) {
    %c0_i32 = arith.constant 0 : i32
    %c0_i32_0 = arith.constant 0 : i32
    %c0_i32_1 = arith.constant 0 : i32
    return %arg0, %c0_i32, %c0_i32_0 : i32, i32, i32
  }
}

</mosaic_0001>

<bundles_post_ra>
// kernel: tpu_custom_call.1
= control target key start
LH: loop header
LB: loop body
LE: loop exit
PB: predicated region body
PF: predicated region fallthrough
CT: control target
= control target key end

     0   :  { %11 = vsyncpa [#allocation5], 0  ;;  %s424_s0 = inlined_call_operand.vmem [shape: f32[16,7], index: 0, kind: input, shape index: {}]   ;;  %s425_s1 = inlined_call_operand.vmem [shape: s32[16,1], index: 1, kind: input, shape index: {}]   ;;  %s426_s2 = inlined_call_operand.vmem [shape: f32[16,1], index: 2, kind: input, shape index: {}]   ;;  %s427_s3 = inlined_call_operand.vmem [shape: f32[1,7], index: 3, kind: input, shape index: {}]   ;;  %s428_s4 = inlined_call_operand.hbm [shape: f32[1,1,1], index: 4, kind: output, shape index: {0}]   ;;  %s429_s5 = inlined_call_operand.hbm [shape: f32[1,1,1], index: 5, kind: output, shape index: {1}]  }
   0x1   :  { %v138_v0 = vld [vmem:[%s425_s1] sm:$0xff] }
   0x2   :  { %12 = vsyncpa [#allocation7], 0  ;;  %v327_v1 = vmov 0   ;;  %v139_v2 = vld [vmem:[%s425_s1 + $0x8] sm:$0xff]  ;;  %v143_v3 = vlaneseq  ;;  %v273_v5 = vld [vmem:[%s427_s3] ss:$0 sm:$0xff] }
   0x3   :  { %278 = vset.pattern.permute.xlu0 %v327_v1  ;;  %vm161_vm0 = vcmask 56320   ;;  %v136_v7 = vld [vmem:[%s424_s0] sm:$0xff]  ;;  %v137_v12 = vld [vmem:[%s424_s0 + $0x8] sm:$0xff]  ;;  %vm121_vm3 = vcmask 7168   ;;  %v328_v18 = vmov 0.0   ;;  %vm213_vm4 = vcmask 0  }
   0x4   :  { %146 = vperm.xlu0 %278, %v138_v0   ;;  %v144_v4 = vand.u32 127, %v143_v3  ;;  %124 = vst.msk [vmem:[#allocation3] sm:$0xff] %vm121_vm3, %v328_v18  ;;  %122 = vst.msk [vmem:[#allocation2] sm:$0xff] %vm121_vm3, %v328_v18  ;;  %v140_v19 = vld [vmem:[%s426_s2] sm:$0xff]  ;;  %v141_v26 = vld [vmem:[%s426_s2 + $0x8] sm:$0xff]  ;;  %s329_s2 = smov [#allocation6]  }
   0x5   :  { %123 = vst.msk [vmem:[#allocation2 + $0x8] sm:$0xff] %vm121_vm3, %v328_v18  ;;  %125 = vst.msk [vmem:[#allocation3 + $0x8] sm:$0xff] %vm121_vm3, %v328_v18  ;;  %v178_v20 = vsub.f32 0.0, %v140_v19  ;;  %v179_v33 = vsub.f32 0.0, %v141_v26  ;;  %s243_s29 = sshll.u32 %s329_s2, 4  ;;  %s330_s30 = smov [#allocation4]   ;;  %s244_s29 = int_to_ptr.vmem [resolvable:$true] %s243_s29 }
   0x6   :  { %s233_s6 = sshll.u32 %s330_s30, 4  ;;  %s279_s7 = scalar_lea.vmem %s244_s29, 16  ;;  %s234_s6 = int_to_ptr.vmem [resolvable:$true] %s233_s6 }
   0x7   :  { %p280_p0 = scmp.ne.s32.totalorder %s244_s29, %s279_s7  ;;  %s283_s8 = scalar_lea.vmem %s244_s29, 32 }
   0x8   :  { %149 = vperm.xlu0 %278, %v139_v2   ;;  %p284_p1 = scmp.lt.s32.totalorder %s244_s29, %s244_s29  ;;  %p285_p2 = scmp.lt.s32.totalorder %s283_s8, %s279_s7 }
   0xa   :  { %p286_p3 = por %p285_p2, %p284_p1 }
   0xb   :  { %v189_v22 = vld [vmem:[#allocation3] sm:$0xff]  ;;  %v176_v25 = vld [vmem:[#allocation2] sm:$0xff] }
   0xc   :  { %v190_v30 = vld [vmem:[#allocation3 + $0x8] sm:$0xff]  ;;  %v177_v36 = vld [vmem:[#allocation2 + $0x8] sm:$0xff]  ;;  %p287_p4 = pnand %p286_p3, %p280_p0 }
  0x83   :  { %v147_v6 = vpop.permute.xlu0 %146 }
  0x84   :  { %vm151_vm1 = vcmp.eq.s32.totalorder %v144_v4, %v147_v6 }
  0x85   :  { %v159_v8 = vsel %vm151_vm1, %v273_v5, 0.0 }
  0x86   :  { %v162_v9 = vsel %vm161_vm0, %v159_v8, 0.0  ;;  %v168_v10 = vmul.f32 %v159_v8, %v136_v7 }
  0x87   :  { %163 = vadd.xlane.f32.xlu1 %v162_v9  ;;  %v150_v11 = vpop.permute.xlu0 %149 }
  0x88   :  { %vm152_vm2 = vcmp.eq.s32.totalorder %v144_v4, %v150_v11  ;;  %v170_v13 = vsel %vm161_vm0, %v168_v10, 0.0 }
  0x89   :  { %171 = vadd.xlane.f32.xlu0 %v170_v13  ;;  %v160_v14 = vsel %vm152_vm2, %v273_v5, 0.0 }
  0x8a   :  { %v165_v15 = vsel %vm161_vm0, %v160_v14, 0.0  ;;  %v169_v16 = vmul.f32 %v160_v14, %v137_v12 }
  0x8b   :  { %166 = vadd.xlane.f32.xlu1 %v165_v15 }
  0x8c   :  { %v173_v17 = vsel %vm161_vm0, %v169_v16, 0.0 }
  0x8f   :  { %174 = vadd.xlane.f32.xlu1 %v173_v17 }
 0x114   :  { %v164_v21 = vpop.xlane.xlu1 %163 }
 0x115   :  { %v191_v23 = vmul.f32 %v164_v21, %v140_v19 }
 0x116   :  { %v172_v24 = vpop.xlane.xlu0 %171 }
 0x117   :  { %v195_v27 = vadd.f32 %v191_v23, %v189_v22  ;;  %v180_v28 = vmul.f32 %v178_v20, %v172_v24 }
 0x118   :  { %v167_v29 = vpop.xlane.xlu1 %166 }
 0x119   :  { %197 = vst.msk [vmem:[#allocation3] sm:$0xff] %vm121_vm3, %v195_v27  ;;  %v184_v31 = vadd.f32 %v180_v28, %v176_v25  ;;  %v192_v32 = vmul.f32 %v167_v29, %v141_v26 }
 0x11b   :  { %187 = vst.msk [vmem:[#allocation2] sm:$0xff] %vm121_vm3, %v184_v31  ;;  %v196_v34 = vadd.f32 %v192_v32, %v190_v30 }
 0x11c   :  { %v175_v35 = vpop.xlane.xlu1 %174 }
 0x11d   :  { %198 = vst.msk [vmem:[#allocation3 + $0x8] sm:$0xff] %vm121_vm3, %v196_v34  ;;  %v181_v37 = vmul.f32 %v179_v33, %v175_v35 }
 0x11f   :  { %v185_v38 = vadd.f32 %v181_v37, %v177_v36 }
 0x120   :  { %v215_v39 = vld [vmem:[#allocation3] sm:$0xff] }
 0x121   :  { %188 = vst.msk [vmem:[#allocation2 + $0x8] sm:$0xff] %vm121_vm3, %v185_v38  ;;  %v217_v41 = vsel %vm121_vm3, %v215_v39, 0.0 }
 0x122   :  { %v202_v43 = vld [vmem:[#allocation2] sm:$0xff] }
 0x123   :  { %v204_v47 = vsel %vm121_vm3, %v202_v43, 0.0 }
 0x124   :  { %v216_v40 = vld [vmem:[#allocation3 + $0x8] sm:$0xff] }
 0x125   :  { %v218_v42 = vsel %vm121_vm3, %v216_v40, 0.0 }
 0x126   :  { %v219_v44 = vadd.f32 %v218_v42, %v217_v41 }
 0x128   :  { %v203_v45 = vld [vmem:[#allocation2 + $0x8] sm:$0xff]  ;;  %v220_v46 = vrot.slane %v219_v44, 4 }
 0x129   :  { %v205_v48 = vsel %vm121_vm3, %v203_v45, 0.0 }
 0x12a   :  { %v206_v49 = vadd.f32 %v205_v48, %v204_v47  ;;  %v221_v50 = vadd.f32 %v220_v46, %v219_v44 }
 0x12c   :  { %v207_v51 = vrot.slane %v206_v49, 4  ;;  %v222_v52 = vrot.slane %v221_v50, 2 }
 0x12e   :  { %v208_v53 = vadd.f32 %v207_v51, %v206_v49  ;;  %v223_v54 = vadd.f32 %v222_v52, %v221_v50 }
 0x130   :  { %v209_v55 = vrot.slane %v208_v53, 2  ;;  %v224_v56 = vrot.slane %v223_v54, 1 }
 0x132   :  { %v210_v57 = vadd.f32 %v209_v55, %v208_v53  ;;  %v225_v58 = vadd.f32 %v224_v56, %v223_v54 }
 0x134   :  { %v211_v59 = vrot.slane %v210_v57, 1  ;;  %226 = vst.msk [vmem:[#allocation6] sm:$0x1] %vm213_vm4, %v225_v58 }
 0x135   :  { %290 = shalt.err (!%p287_p4)
}
 0x136   :  { %s291_s11 = scalar_lea.hbm %s429_s5, 16 }
 0x137   :  { %p292_p5 = scmp.ne.s32.totalorder %s429_s5, %s291_s11  ;;  %p295_p6 = scmp.lt.u32.totalorder %s291_s11, %s429_s5 }
 0x139   :  { %p297_p7 = pnand %p295_p6, %p292_p5 }
 0x13b   :  { %300 = shalt.err (!%p297_p7)
}
 0x13c   :  { %246 = dma.vmem_to_hbm [thread:$0]  %s244_s29, 16, %s429_s5, [#allocation7]   ;;  %v212_v60 = vadd.f32 %v211_v59, %v210_v57 }
 0x13d   :  { %s301_s18 = scalar_lea.vmem %s234_s6, 16  ;;  %s305_s19 = scalar_lea.vmem %s234_s6, 32 }
 0x13e   :  { %214 = vst.msk [vmem:[#allocation4] sm:$0x1] %vm213_vm4, %v212_v60  ;;  %p302_p8 = scmp.ne.s32.totalorder %s234_s6, %s301_s18  ;;  %p306_p9 = scmp.lt.s32.totalorder %s234_s6, %s234_s6 }
 0x13f   :  { %p307_p10 = scmp.lt.s32.totalorder %s305_s19, %s301_s18 }
 0x141   :  { %p308_p11 = por %p307_p10, %p306_p9 }
 0x143   :  { %p309_p12 = pnand %p308_p11, %p302_p8 }
 0x145   :  { %312 = shalt.err (!%p309_p12)
}
 0x146   :  { %s313_s22 = scalar_lea.hbm %s428_s4, 16 }
 0x147   :  { %p314_p13 = scmp.ne.s32.totalorder %s428_s4, %s313_s22  ;;  %p317_p0 = scmp.lt.u32.totalorder %s313_s22, %s428_s4 }
 0x149   :  { %p319_p1 = pnand %p317_p0, %p314_p13 }
 0x14b   :  { %322 = shalt.err (!%p319_p1)
}
 0x14c   :  { %236 = dma.vmem_to_hbm [thread:$0]  %s234_s6, 16, %s428_s4, [#allocation5]  }
 0x14d   :  { %323 = dma.done.wait [#allocation5], 16  }
 0x14e   :  { %324 = vsyncadd [#allocation5], 4294967280 }
 0x14f   :  { %325 = dma.done.wait [#allocation7], 16  }
 0x150   :  { %326 = vsyncadd [#allocation7], 4294967280 }
 0x151   :  { %253 = vsyncpa [#allocation5], 1 }
 0x152   :  { %254 = vsyncpa [#allocation7], 1 }

</bundles_post_ra>
